<compile_context>
chip_gen: v5e
topology: v5e:2x2
jax: 0.10.0
libtpu: 0.0.40
codegen_flags: <defaults>
</compile_context>

<pallas_src>
import functools

import jax
import jax.numpy as jnp
from jax.experimental import pallas as pl
from jax.experimental.pallas import tpu as pltpu


def _cdiv(a: int, b: int) -> int:
    return -(-a // b)


def _round_up(x: int, m: int) -> int:
    return _cdiv(x, m) * m


def _gate_conv_kernel(*refs, taps, shift):
    """Fused conv-as-GEMM + bias + GLU gating for one (batch, spatial) tile.

    taps == 1 : refs = (xw, w, b, o); xw already contains all k_t*k_f taps
                (full-im2col fallback, or k_t == 1).
    taps  > 1 : refs = (xw, halo, w, b, o); xw holds the k_f*C_in "column"
                rows of this tile and the k_t causal taps are lane-shifted
                windows of concat([xw, halo], axis=-1), shift = F_out per tap.
    """
    if taps == 1:
        xw_ref, w_ref, b_ref, o_ref = refs
    else:
        xw_ref, halo_ref, w_ref, b_ref, o_ref = refs

    xw = xw_ref[...]                                           # (Kr, n_tile)
    n = xw.shape[-1]

    # Tap 0 always reads the un-shifted window; f32 accumulation on the MXU.
    y = jnp.dot(w_ref[0], xw, preferred_element_type=jnp.float32)
    if taps > 1:
        win = jnp.concatenate([xw, halo_ref[...]], axis=-1)    # (Kr, n + halo)
        for kt in range(1, taps):
            y = y + jnp.dot(w_ref[kt],
                            win[:, kt * shift: kt * shift + n],
                            preferred_element_type=jnp.float32)

    y = y + b_ref[...]                                         # (2*C_out, n), f32

    c_out = o_ref.shape[0]
    out, gate = y[:c_out], y[c_out:]
    # sigmoid: exp on the EUP; approximate reciprocal also rides the EUP slot.
    sig = pl.reciprocal(1.0 + jnp.exp(-gate), approx=True)
    o_ref[...] = (out * sig).astype(o_ref.dtype)


@functools.partial(jax.jit, static_argnames=("stride", "n_tile", "compute_dtype"))
def gate_conv2d(x, w, b, *, stride, n_tile=1024, compute_dtype=jnp.bfloat16):
    """GateConv2d forward.

    x: (B, C_in, T, F) or (B, T, F);  w: (2*C_out, C_in, k_t, k_f);  b: (2*C_out,)
    Returns (B, C_out, T_out, F_out) in x.dtype.
    """
    if x.ndim == 3:
        x = x[:, None, :, :]                                   # unsqueeze(dim=1)
    B, C_in, T, F = x.shape
    two_cout, c_in_w, k_t, k_f = w.shape
    assert c_in_w == C_in and two_cout % 2 == 0
    C_out = two_cout // 2
    s_t, s_f = stride
    cdtype = compute_dtype if compute_dtype is not None else x.dtype
    out_dtype = x.dtype

    # Causal (left) zero-padding along time, exactly ConstantPad2d((0,0,k_t-1,0)).
    if k_t > 1:
        x = jnp.pad(x, ((0, 0), (0, 0), (k_t - 1, 0), (0, 0)))
    T_pad = x.shape[2]
    T_out = (T_pad - k_t) // s_t + 1
    F_out = (F - k_f) // s_f + 1
    N_out = T_out * F_out

    # Fast path: stride_t == 1 -> time taps become constant lane shifts (F_out)
    # of the flattened (time, freq) axis, so no k_t duplication is needed.
    fast = (s_t == 1 and k_t > 1)

    # ---- spatial tiling: lane-dense, 128-aligned, minimal padding -----------
    max_tile = max(128, min(n_tile, _round_up(N_out, 128)))
    tile = _round_up(_cdiv(N_out, _cdiv(N_out, max_tile)), 128)
    if fast:
        halo_w = _round_up((k_t - 1) * F_out, 128)             # halo block width
        tile = _round_up(tile, halo_w)                         # halo index math
    else:
        halo_w = 0
    n_tiles = _cdiv(N_out, tile)
    N_pad = n_tiles * tile

    if fast:
        taps, shift = k_t, F_out
        # k_f-strided columns only: (B, k_f*C_in, T_pad, F_out) -> flatten spatial.
        cols = [x[:, :, :, kf: kf + (F_out - 1) * s_f + 1: s_f] for kf in range(k_f)]
        Kr = k_f * C_in
        xw = jnp.concatenate(cols, axis=1).reshape(B, Kr, T_pad * F_out)
        # Per-time-tap weights, flattened over (kf, ci) to match xw's row order.
        w_flat = jnp.transpose(w, (2, 0, 3, 1)).reshape(k_t, two_cout, Kr)
    else:
        taps, shift = 1, 0
        # Full im2col fallback (k_t == 1, or a strided time conv).
        patches = []
        for kt in range(k_t):
            for kf in range(k_f):
                patches.append(
                    x[:, :,
                      kt: kt + (T_out - 1) * s_t + 1: s_t,
                      kf: kf + (F_out - 1) * s_f + 1: s_f])
        Kr = k_t * k_f * C_in
        xw = jnp.stack(patches, axis=1).reshape(B, Kr, N_out)
        w_flat = jnp.transpose(w, (0, 2, 3, 1)).reshape(1, two_cout, Kr)

    # Pad the flattened spatial axis so every block (and the halo block of the
    # last tile) stays in range; pad columns only produce junk that is sliced off.
    width = N_pad + halo_w
    xw = jnp.pad(xw, ((0, 0), (0, 0), (0, width - xw.shape[-1]))).astype(cdtype)
    w_flat = w_flat.astype(cdtype)
    b_col = b.astype(jnp.float32).reshape(two_cout, 1)

    kernel = functools.partial(_gate_conv_kernel, taps=taps, shift=shift)

    in_specs = [pl.BlockSpec((None, Kr, tile), lambda bi, ni: (bi, 0, ni))]
    operands = [xw]
    if fast:
        halo_ratio = tile // halo_w
        in_specs.append(
            pl.BlockSpec((None, Kr, halo_w),
                         lambda bi, ni: (bi, 0, (ni + 1) * halo_ratio)))
        operands.append(xw)          # halo = next window of the same array
    in_specs += [
        pl.BlockSpec((taps, two_cout, Kr), lambda bi, ni: (0, 0, 0)),  # resident W
        pl.BlockSpec((two_cout, 1), lambda bi, ni: (0, 0)),            # resident b
    ]
    operands += [w_flat, b_col]

    out = pl.pallas_call(
        kernel,
        out_shape=jax.ShapeDtypeStruct((B, C_out, N_pad), out_dtype),
        grid_spec=pltpu.PrefetchScalarGridSpec(
            num_scalar_prefetch=0,
            grid=(B, n_tiles),
            in_specs=in_specs,
            out_specs=pl.BlockSpec((None, C_out, tile), lambda bi, ni: (bi, 0, ni)),
        ),
        compiler_params=pltpu.CompilerParams(
            dimension_semantics=("parallel", "parallel"),
            # Explicit scoped-VMEM budget: above v5e's 16 MiB default, within
            # v7x's 64 MiB physical.  Per-step usage at n_tile=1024 is only a
            # few MiB; raise this if sweeping much larger tiles.
            vmem_limit_bytes=32 * 1024 * 1024),
    )(*operands)

    return out[:, :, :N_out].reshape(B, C_out, T_out, F_out)


def _reference(x, w, b, *, stride):
    # Pure-JAX reference mirroring the PyTorch forward exactly.
    if x.ndim == 3:
        x = x[:, None, :, :]
    k_t = w.shape[2]
    if k_t > 1:
        x = jnp.pad(x, ((0, 0), (0, 0), (k_t - 1, 0), (0, 0)))
    y = jax.lax.conv_general_dilated(
        x, w, window_strides=stride, padding="VALID",
        dimension_numbers=("NCHW", "OIHW", "NCHW"),
        precision=jax.lax.Precision.HIGHEST)
    y = y + b.reshape(1, -1, 1, 1)
    out, gate = jnp.split(y, 2, axis=1)
    return out * jax.nn.sigmoid(gate)


if __name__ == "__main__":
    key = jax.random.PRNGKey(0)
    kx, kw, kb = jax.random.split(key, 3)

    # EaBNet-style GateConv2d config: causal k_t=2, freq kernel 3, freq stride 2.
    B, C_in, T, F, C_out = 2, 4, 16, 16, 8
    kernel_size, stride = (2, 3), (1, 2)
    x = jax.random.normal(kx, (B, C_in, T, F), dtype=jnp.float32)
    w = 0.1 * jax.random.normal(kw, (2 * C_out, C_in) + kernel_size, dtype=jnp.float32)
    b = 0.1 * jax.random.normal(kb, (2 * C_out,), dtype=jnp.float32)
    ref = _reference(x, w, b, stride=stride)

    # 1) f32 compute path: structural correctness at tight tolerance.
    out = jax.block_until_ready(
        gate_conv2d(x, w, b, stride=stride, compute_dtype=jnp.float32))
    assert out.shape == ref.shape, (out.shape, ref.shape)
    assert bool(jnp.all(jnp.isfinite(out)))
    assert jnp.allclose(out, ref, atol=5e-3, rtol=5e-3), \
        float(jnp.max(jnp.abs(out - ref)))

    # 2) bf16 activations/weights (default perf path), f32 accumulation + gating.
    out_bf16 = jax.block_until_ready(
        gate_conv2d(x, w, b, stride=stride, compute_dtype=jnp.bfloat16))
    assert jnp.allclose(out_bf16, ref, atol=4e-2, rtol=4e-2), \
        float(jnp.max(jnp.abs(out_bf16 - ref)))

    # 3) k_t == 1 config exercises the taps == 1 (full-im2col) fallback path.
    w1 = 0.1 * jax.random.normal(kw, (2 * C_out, C_in, 1, 3), dtype=jnp.float32)
    ref1 = _reference(x, w1, b, stride=(1, 1))
    out1 = jax.block_until_ready(
        gate_conv2d(x, w1, b, stride=(1, 1), compute_dtype=jnp.float32))
    assert out1.shape == ref1.shape, (out1.shape, ref1.shape)
    assert jnp.allclose(out1, ref1, atol=5e-3, rtol=5e-3), \
        float(jnp.max(jnp.abs(out1 - ref1)))

    print("KERNEL_OK")
</pallas_src>

<mosaic_0001>
module attributes {stable_mosaic.version = 11 : i64} {
  func.func @_gate_conv_kernel(%arg0: i32, %arg1: i32, %arg2: memref<1x12x128xf32, #tpu.memory_space<vmem>>, %arg3: memref<1x12x128xf32, #tpu.memory_space<vmem>>, %arg4: memref<2x16x12xf32, #tpu.memory_space<vmem>>, %arg5: memref<16x1xf32, #tpu.memory_space<vmem>>, %arg6: memref<1x8x128xf32, #tpu.memory_space<vmem>>) attributes {dimension_semantics = [#tpu.dimension_semantics<parallel>, #tpu.dimension_semantics<parallel>], iteration_bounds = array<i64: 2, 1>, scalar_prefetch = 0 : i64, scratch_operands = 0 : i64, tpu.core_type = #tpu.core_type<tc>, window_params = [{transform_indices = @transform_0, window_bounds = array<i64: 1, 12, 128>}, {transform_indices = @transform_1, window_bounds = array<i64: 1, 12, 128>}, {pipeline_mode = #tpu.pipeline_mode<synchronous>, transform_indices = @transform_2, window_bounds = array<i64: 2, 16, 12>}, {pipeline_mode = #tpu.pipeline_mode<synchronous>, transform_indices = @transform_3, window_bounds = array<i64: 16, 1>}, {transform_indices = @transform_4, window_bounds = array<i64: 1, 8, 128>}]} {
    %c0 = arith.constant 0 : index
    %c0_0 = arith.constant 0 : index
    %c0_1 = arith.constant 0 : index
    %0 = vector.load %arg2[%c0, %c0_0, %c0_1] : memref<1x12x128xf32, #tpu.memory_space<vmem>>, vector<1x12x128xf32>
    %1 = vector.shape_cast %0 : vector<1x12x128xf32> to vector<12x128xf32>
    %c0_2 = arith.constant 0 : index
    %c0_3 = arith.constant 0 : index
    %c0_4 = arith.constant 0 : index
    %2 = vector.load %arg4[%c0_2, %c0_3, %c0_4] : memref<2x16x12xf32, #tpu.memory_space<vmem>>, vector<1x16x12xf32>
    %3 = vector.shape_cast %2 : vector<1x16x12xf32> to vector<16x12xf32>
    %cst = arith.constant dense<0.000000e+00> : vector<16x128xf32>
    %4 = tpu.matmul %3, %1, %cst {dimension_numbers = #tpu.dot_dimension_numbers<[1], [0], [0], [1], [0, 0, 1, 1], [], []>} : vector<16x12xf32>, vector<12x128xf32>, vector<16x128xf32> -> vector<16x128xf32>
    %c0_5 = arith.constant 0 : index
    %c0_6 = arith.constant 0 : index
    %c0_7 = arith.constant 0 : index
    %5 = vector.load %arg3[%c0_5, %c0_6, %c0_7] : memref<1x12x128xf32, #tpu.memory_space<vmem>>, vector<1x12x128xf32>
    %6 = vector.shape_cast %5 : vector<1x12x128xf32> to vector<12x128xf32>
    %7 = tpu.concatenate %1, %6 in 1 : vector<12x128xf32>, vector<12x128xf32> -> vector<12x256xf32>
    %c1 = arith.constant 1 : index
    %c0_8 = arith.constant 0 : index
    %c0_9 = arith.constant 0 : index
    %8 = vector.load %arg4[%c1, %c0_8, %c0_9] : memref<2x16x12xf32, #tpu.memory_space<vmem>>, vector<1x16x12xf32>
    %9 = vector.shape_cast %8 : vector<1x16x12xf32> to vector<16x12xf32>
    %10 = vector.extract_strided_slice %7 {offsets = [0, 7], sizes = [12, 128], strides = [1, 1]} : vector<12x256xf32> to vector<12x128xf32>
    %cst_10 = arith.constant dense<0.000000e+00> : vector<16x128xf32>
    %11 = tpu.matmul %9, %10, %cst_10 {dimension_numbers = #tpu.dot_dimension_numbers<[1], [0], [0], [1], [0, 0, 1, 1], [], []>} : vector<16x12xf32>, vector<12x128xf32>, vector<16x128xf32> -> vector<16x128xf32>
    %12 = arith.addf %4, %11 : vector<16x128xf32>
    %c0_11 = arith.constant 0 : index
    %c0_12 = arith.constant 0 : index
    %13 = vector.load %arg5[%c0_11, %c0_12] : memref<16x1xf32, #tpu.memory_space<vmem>>, vector<16x1xf32>
    %14 = vector.broadcast %13 : vector<16x1xf32> to vector<16x128xf32>
    %15 = arith.addf %12, %14 : vector<16x128xf32>
    %16 = vector.extract_strided_slice %15 {offsets = [0, 0], sizes = [8, 128], strides = [1, 1]} : vector<16x128xf32> to vector<8x128xf32>
    %17 = vector.extract_strided_slice %15 {offsets = [8, 0], sizes = [8, 128], strides = [1, 1]} : vector<16x128xf32> to vector<8x128xf32>
    %cst_13 = arith.constant 0.000000e+00 : f32
    %18 = vector.broadcast %cst_13 : f32 to vector<8x128xf32>
    %19 = arith.subf %18, %17 : vector<8x128xf32>
    %20 = math.exp %19 : vector<8x128xf32>
    %cst_14 = arith.constant 1.000000e+00 : f32
    %21 = vector.broadcast %cst_14 : f32 to vector<8x128xf32>
    %22 = arith.addf %21, %20 : vector<8x128xf32>
    %23 = tpu.reciprocal %22 {approx = true} : vector<8x128xf32> -> vector<8x128xf32>
    %24 = arith.mulf %16, %23 : vector<8x128xf32>
    %c0_15 = arith.constant 0 : index
    %c0_16 = arith.constant 0 : index
    %c0_17 = arith.constant 0 : index
    %25 = vector.load %arg6[%c0_15, %c0_16, %c0_17] : memref<1x8x128xf32, #tpu.memory_space<vmem>>, vector<1x8x128xf32>
    %26 = vector.shape_cast %25 : vector<1x8x128xf32> to vector<8x128xf32>
    %27 = vector.shape_cast %24 : vector<8x128xf32> to vector<1x8x128xf32>
    tpu.vector_store %arg6[%c0_15, %c0_16, %c0_17], %27 {strides = array<i32>} : memref<1x8x128xf32, #tpu.memory_space<vmem>>, vector<1x8x128xf32>,
    return
  }
  func.func @transform_0(%arg0: i32, %arg1: i32) -> (i32, i32, i32) {
    %c0_i32 = arith.constant 0 : i32
    %c0_i32_0 = arith.constant 0 : i32
    return %arg0, %c0_i32, %arg1 : i32, i32, i32
  }
  func.func @transform_1(%arg0: i32, %arg1: i32) -> (i32, i32, i32) {
    %c1_i32 = arith.constant 1 : i32
    %0 = arith.addi %arg1, %c1_i32 : i32
    %c1_i32_0 = arith.constant 1 : i32
    %1 = arith.muli %0, %c1_i32_0 : i32
    %c0_i32 = arith.constant 0 : i32
    %c0_i32_1 = arith.constant 0 : i32
    return %arg0, %c0_i32, %1 : i32, i32, i32
  }
  func.func @transform_2(%arg0: i32, %arg1: i32) -> (i32, i32, i32) {
    %c0_i32 = arith.constant 0 : i32
    %c0_i32_0 = arith.constant 0 : i32
    %c0_i32_1 = arith.constant 0 : i32
    %c0_i32_2 = arith.constant 0 : i32
    return %c0_i32, %c0_i32_0, %c0_i32_1 : i32, i32, i32
  }
  func.func @transform_3(%arg0: i32, %arg1: i32) -> (i32, i32) {
    %c0_i32 = arith.constant 0 : i32
    %c0_i32_0 = arith.constant 0 : i32
    %c0_i32_1 = arith.constant 0 : i32
    return %c0_i32, %c0_i32_0 : i32, i32
  }
  func.func @transform_4(%arg0: i32, %arg1: i32) -> (i32, i32, i32) {
    %c0_i32 = arith.constant 0 : i32
    %c0_i32_0 = arith.constant 0 : i32
    return %arg0, %c0_i32, %arg1 : i32, i32, i32
  }
}

</mosaic_0001>

<bundles_post_ra>
// kernel: gate_conv2d.1
= control target key start
LH: loop header
LB: loop body
LE: loop exit
PB: predicated region body
PF: predicated region fallthrough
CT: control target
= control target key end

     0   :  { %s689_s15 = smov 0   ;;  %s691_s16 = smov 0   ;;  %s794_s0 = inlined_call_operand.vmem [shape: f32[2,12,256], index: 0, kind: input, shape index: {}, may-alias: {0,1}]   ;;  %s795_s1 = inlined_call_operand.vmem [shape: f32[2,12,256], index: 1, kind: input, shape index: {}, may-alias: {0,1}]   ;;  %s796_s2 = inlined_call_operand.vmem [shape: f32[2,16,12], index: 2, kind: input, shape index: {}]   ;;  %s797_s3 = inlined_call_operand.vmem [shape: f32[16,1], index: 3, kind: input, shape index: {}]   ;;  %s798_s4 = inlined_call_operand.vmem [shape: f32[2,8,128], index: 4, kind: output, shape index: {}]  }
   0x1   :  { %s693_s17 = smov 0   ;;  %s695_s18 = smov 0  }
   0x2   :  { %s697_s19 = smov 0  }
   0x3 LB: > { %s26_s20 = sadd.s32 1, %s656_s18  ;;  %p42_p1 = scmp.ne.s32.totalorder %s648_s16, %s644_s15  ;;  %s660_s19 = sphi %s697_s19, %s14_s19   ;;  %s656_s18 = sphi %s695_s18, %s803_s18   ;;  %s652_s17 = sphi %s693_s17, %s802_s17   ;;  %s648_s16 = sphi %s691_s16, %s801_s16   ;;  %s644_s15 = sphi %s689_s15, %s800_s15  }
   0x4   : > { %p28_p0 = scmp.ge.s32.totalorder %s26_s20, 2  ;;  %p43_p2 = scmp.eq.s32.totalorder %s660_s19, 0 }
   0x5   : > { %s35_s23 = sadd.s32 1, %s648_s16  ;;  %p539_p5 = scmp.ge.s32.totalorder %s660_s19, 2 }
   0x6   : > { %s805_s20 = smov (%p28_p0, %s26_s20), 0  ;;  %p720_p3 = por %p43_p2, %p42_p1 }
   0x7   : > { %s30_s22 = ssub.s32 %s656_s18, %s805_s20  ;;  %174 = sbr.rel (%p539_p5) target bundleno = 24 (0x18), region = 24 }
   0x8   : > { %p33_p4 = scmp.eq.s32.totalorder %s30_s22, 0 }
   0xa   : > { %s728_s24 = scalar_select %p33_p4, %s648_s16, %s35_s23  }
   0xc   : > { %177 = sbr.rel (!%p720_p3) target bundleno = 18 (0x12), region = 28  ;;  %s179_s25 = sand.u32 (%p720_p3), 1, %s648_s16  }
   0xd   : > { %s562_s26 = sshll.u32 (%p720_p3), %s656_s18, 5  ;;  %s540_s27 = sshll.u32 (%p720_p3), %s179_s25, 4 }
   0xe   : > { %s185_s30 = scalar_lea.vmem (%p720_p3), %s794_s0, %s562_s26  ;;  %s181_s5 = scalar_lea.vmem (%p720_p3), [#allocation2], %s540_s27 }
   0xf   : > { %v216_v0 = vld [vmem:[%s185_s30] sm:$0xff] (%p720_p3)  ;;  %v218_v1 = vld [vmem:[%s185_s30 + $0x10] sm:$0xff] (%p720_p3) }
  0x10   : > { %217 = vst [vmem:[%s181_s5] sm:$0xff] (%p720_p3), %v216_v0 }
  0x11   : > { %219 = vst [vmem:[%s181_s5 + $0x8] sm:$0xff] %v218_v1 }
  0x12 PF: > { %225 = sbr.rel (!%p720_p3) target bundleno = 24 (0x18), region = 66  ;;  %s227_s6 = sand.u32 (%p720_p3), 1, %s648_s16  }
  0x13   : > { %s563_s7 = sshll.u32 (%p720_p3), %s656_s18, 5  ;;  %s543_s8 = sshll.u32 (%p720_p3), %s227_s6, 4 }
  0x14   : > { %s472_s11 = scalar_lea.vmem (%p720_p3), %s795_s1, %s563_s7  ;;  %s229_s12 = scalar_lea.vmem (%p720_p3), [#allocation3], %s543_s8 }
  0x15   : > { %v546_v2 = vld [vmem:[%s472_s11 + $0x8] sm:$0xff] (%p720_p3)  ;;  %v547_v3 = vld [vmem:[%s472_s11 + $0x18] sm:$0xff] (%p720_p3) }
  0x16   : > { %266 = vst [vmem:[%s229_s12] sm:$0xff] (%p720_p3), %v546_v2 }
  0x17   : > { %268 = vst [vmem:[%s229_s12 + $0x8] sm:$0xff] %v547_v3 }
  0x18 PF: > { %p548_p6 = scmp.ge.s32.totalorder %s660_s19, 1  ;;  %p273_p7 = scmp.lt.s32.totalorder %s660_s19, 3 }
  0x1a   : > { %p274_p8 = pnand %p548_p6, %p273_p7 }
  0x1b   : > { %s280_s13 = sand.u32 (!%p274_p8), 1, %s644_s15   ;;  %s662_s22 = smov (!%p274_p8), 121  }
  0x1c   : > { %277 = sbr.rel (%p274_p8) target bundleno = 320 (0x140), region = 104  ;;  %s549_s14 = sshll.u32 (!%p274_p8), %s280_s13, 4 }
  0x1d   : > { %s282_s21 = scalar_lea.vmem (!%p274_p8), [#allocation2], %s549_s14  ;;  %s289_s23 = scalar_lea.vmem (!%p274_p8), [#allocation3], %s549_s14 }
  0x1e   : > { %p319_p9 = scmp.lt.s32.totalorder (!%p274_p8), %s652_s17, 1 }
  0x21   : > { %v327_v4 = vld [vmem:[%s282_s21 + $0x8] sm:$0xf]  ;;  %v326_v5 = vld [vmem:[%s282_s21] sm:$0xff]  ;;  %vm358_vm0 = vcmask 1043456   ;;  %vm351_vm1 = vcmask 97280   ;;  %v663_v12 = vmov 0  }
  0x22   : > { %343 = vrot.lane.b32.xlu0 %v327_v4, %s662_s22  ;;  %v330_v6 = vld [vmem:[%s289_s23] sm:$0xff]  ;;  %v331_v8 = vld [vmem:[%s289_s23 + $0x8] sm:$0xf]  ;;  %566 = vmatpush.msk.msra.mxu3 %vm358_vm0, %v327_v4  ;;  %vm347_vm2 = vcmask 990208   ;;  %s807_s17 = smov (!%p319_p9, %s652_s17), 1 }
  0x23   : > { %v610_v7 = vpack.i.bf16 %v330_v6, %v326_v5  ;;  %557 = vmatpush.msk.msra.mxu1 %vm358_vm0, %v327_v4  ;;  %v329_v9 = vld [vmem:[%s796_s2 + $0x8] sm:$0xff]  ;;  %v328_v11 = vld [vmem:[%s796_s2] sm:$0xff]  ;;  %615 = vset.pattern.permute.xlu1 %v663_v12  ;;  %v553_v21 = vld [vmem:[%s796_s2 + $0x18] sm:$0xff]  ;;  %s551_s10 = sshll.u32 %s807_s17, 3 }
  0x24   : > { %567 = vmatpush.msra.mxu3 %v326_v5  ;;  %v416_v10 = vld [vmem:[%s797_s3 + $0x8] sm:$0xff]  ;;  %v415_v13 = vld [vmem:[%s797_s3] sm:$0xff]  ;;  %616 = vset.pattern.permute.xlu2 %v663_v12  ;;  %v552_v22 = vld [vmem:[%s796_s2 + $0x10] sm:$0xff]  ;;  %s325_s13 = scalar_lea.vmem %s798_s4, %s551_s10 }
  0x25   : > { %611 = vrot.lane.b32.xlu1 %v610_v7, %s662_s22  ;;  %407 = vmatpush.msra.mxu1 %v326_v5 }
  0x26   : > { %559 = vmatmul.msk.f32.vlgmr.msra.gmra.mxu3 %vm351_vm1, %v329_v9  ;;  %558 = vmatmul.msk.f32.vlgmr.msra.gmra.mxu1 %vm351_vm1, %v328_v11 }
  0x27   : > { %419 = vperm.xlu2 %616, %v415_v13   ;;  %617 = vset.pattern.permute.xlu0 %v663_v12 }
  0x2a   : > { %345 = vrot.lane.b32.xlu0 %v331_v8, %s662_s22 }
  0x2d   : > { %424 = vperm.xlu1 %615, %v416_v10  }
  0x81   : > { %v420_v35 = vpop.permute.xlu2 %419 }
  0x94   : > { %v344_v14 = vpop.permute.xlu0 %343 }
  0x97   : > { %v612_v15 = vpop.permute.xlu1 %611 }
  0x98   : > { %v614_v16 = vunpack.i.h.bf16 %v612_v15  ;;  %v613_v17 = vunpack.i.l.bf16 %v612_v15 }
  0x9a   : > { %v348_v20 = vsel %vm347_vm2, %v613_v17, %v614_v16 }
  0x9c   : > { %v346_v18 = vpop.permute.xlu0 %345 }
  0x9d   : > { %v349_v19 = vsel %vm347_vm2, %v344_v14, %v346_v18 }
  0x9e   : > { %554 = vmatpush.msk.msra.mxu0 %vm358_vm0, %v349_v19  ;;  %564 = vmatpush.msk.msra.mxu2 %vm358_vm0, %v349_v19 }
  0x9f   : > { %v425_v25 = vpop.permute.xlu1 %424 }
  0xa0   : > { %376 = vmatpush.msra.mxu0 %v348_v20  ;;  %565 = vmatpush.msra.mxu2 %v348_v20 }
  0xa1   : > { %556 = vmatmul.msk.f32.vlgmr.msra.gmra.mxu2 %vm351_vm1, %v553_v21  ;;  %555 = vmatmul.msk.f32.vlgmr.msra.gmra.mxu0 %vm351_vm1, %v552_v22 }
  0xa3   : > { %v409_v31 = vpop.f32.mrf.mxu1 }
  0xa9   : > { %v412_v23 = vpop.f32.mrf.mxu3 }
 0x11e   : > { %v378_v30 = vpop.f32.mrf.mxu0 }
 0x11f   : > { %v410_v34 = vadd.f32 %v409_v31, %v378_v30 }
 0x121   : > { %v427_v36 = vadd.f32 %v420_v35, %v410_v34 }
 0x124   : > { %v381_v24 = vpop.f32.mrf.mxu2 }
 0x125   : > { %v413_v26 = vadd.f32 %v412_v23, %v381_v24 }
 0x127   : > { %v428_v27 = vadd.f32 %v425_v25, %v413_v26 }
 0x129   : > { %v429_v28 = vsub.f32 0.0, %v428_v27 }
 0x12b   : > { %v430_v29 = vmul.f32 1.442695, %v429_v28 }
 0x12d   : > { %618 = vpow2.f32 %v430_v29 }
 0x133   : > { %v619_v32 = vpop.eup %618 }
 0x134   : > { %v432_v33 = vadd.f32 1.0, %v619_v32 }
 0x136   : > { %620 = vrcp.f32 %v432_v33 }
 0x13c   : > { %v621_v37 = vpop.eup %620 }
 0x13d   : > { %v434_v38 = vmul.f32 %v621_v37, %v427_v36 }
 0x13f   : > { %435 = vst [vmem:[%s325_s13] sm:$0xff] %v434_v38 }
 0x140 PF: > { %s14_s19 = sadd.s32 1, %s660_s19   ;;  %s800_s15 = smov %s648_s16 }
 0x141   : > { %p11_p10 = scmp.ge.s32.totalorder %s14_s19, 4   ;;  %s801_s16 = smov %s728_s24 }
 0x142   : > { %s802_s17 = smov %s656_s18  ;;  %s803_s18 = smov %s805_s20 }
 0x143   :  { %13 = sbr.rel (!%p11_p10) target bundleno = 3 (0x3), region = 156 }

</bundles_post_ra>
